<compile_context>
chip_gen: v7x
topology: tpu7x:2x2x1
jax: 0.10.0
libtpu: 0.0.40
codegen_flags: <defaults>
</compile_context>

<pallas_src>
import functools

import jax
import jax.numpy as jnp
import numpy as np
from jax.experimental import pallas as pl
from jax.experimental.pallas import tpu as pltpu

BN_EPS = 1e-5
LANE = 128
SUBLANE = 8


def _round_up(x, m):
    return (x + m - 1) // m * m


# ---------------------------------------------------------------------------
# Kernel
# ---------------------------------------------------------------------------
def generator_kernel(x_ref, w_ref, aff_ref, o_ref, *, gb, n_real, n_pad):
    """One grid step = GB independent BN-batches (GB generator invocations).

    x_ref:   (gb, n_pad, c_max)  zero-padded inputs (rows >= n_real and cols >=
                                 latent_dim are zero)
    w_ref:   (5, c_max, c_max)   zero-padded weight stack, layer-major
    aff_ref: (5, 2, c_max)       [gamma, beta] for layers 0..3, [0, bias] for layer 4
    o_ref:   (gb, n_pad, c_max)  lane-dense output (real channels in [:num_channels])
    """
    c_max = x_ref.shape[-1]
    m = gb * n_pad
    inv_n = jnp.float32(1.0 / n_real)

    need_row_mask = n_pad != n_real
    if need_row_mask:
        # Full-lane mask (one tile); broadcasts over the leading group dim only.
        row_ids = jax.lax.broadcasted_iota(jnp.int32, (1, n_pad, c_max), 1)
        row_mask = (row_ids < n_real).astype(jnp.float32)

    # Flat (M, C) view feeds the MXU with M = gb * n_pad rows per matmul.
    h2 = x_ref[...].reshape(m, c_max).astype(jnp.float32)

    # Four (conv1x1 -> BatchNorm2d(train) -> ReLU) blocks.
    for li in range(4):
        h2 = jnp.dot(h2, w_ref[li], preferred_element_type=jnp.float32)
        h3 = h2.reshape(gb, n_pad, c_max)                 # per-group view for BN
        # Biased batch statistics over N (H = W = 1), independently per group.
        # Padded rows are zero entering the matmul, so sum/n_real is the true
        # mean; the row mask is folded into the variance sum only.
        mu = jnp.sum(h3, axis=1, keepdims=True) * inv_n   # (gb, 1, c_max)
        centered = h3 - mu
        if need_row_mask:
            var = jnp.sum(centered * centered * row_mask, axis=1,
                          keepdims=True) * inv_n
        else:
            var = jnp.sum(centered * centered, axis=1, keepdims=True) * inv_n
        gamma = aff_ref[li, 0:1, :].reshape(1, 1, c_max)
        beta = aff_ref[li, 1:2, :].reshape(1, 1, c_max)
        scale = gamma * jax.lax.rsqrt(var + BN_EPS)
        h3 = jnp.maximum(centered * scale + beta, 0.0)
        if need_row_mask:
            h3 = h3 * row_mask                            # keep pad rows at 0
        h2 = h3.reshape(m, c_max)

    # Final conv1x1 with bias (no BN / ReLU).
    out = jnp.dot(h2, w_ref[4], preferred_element_type=jnp.float32) + aff_ref[4, 1:2, :]
    o_ref[...] = out.reshape(gb, n_pad, c_max).astype(o_ref.dtype)


# ---------------------------------------------------------------------------
# Parameter packing + pallas_call wrappers
# ---------------------------------------------------------------------------
def pack_params(params, latent_dim):
    """Pack PyTorch-shaped params into two lane-dense, zero-padded buffers.

    Call this ONCE and reuse (w_stack, aff) across forwards (hoisted out of the
    hot path per the perf review)."""
    (w1, g1, b1, w2, g2, b2, w3, g3, b3, w4, g4, b4, w5, bias5) = params
    ws = [w1, w2, w3, w4, w5]
    all_dims = [latent_dim] + [int(w.shape[1]) for w in ws]
    c_max = _round_up(max(all_dims), LANE)

    def pad_w(w):
        cin, cout = w.shape
        return jnp.pad(w.astype(jnp.float32), ((0, c_max - cin), (0, c_max - cout)))

    def pad_v(v):
        v = jnp.reshape(v, (-1,)).astype(jnp.float32)
        return jnp.pad(v, (0, c_max - v.shape[0]))

    w_stack = jnp.stack([pad_w(w) for w in ws])             # (5, c_max, c_max)

    aff_rows = [jnp.stack([pad_v(g), pad_v(b)])
                for g, b in ((g1, b1), (g2, b2), (g3, b3), (g4, b4))]
    aff_rows.append(jnp.stack([jnp.zeros((c_max,), jnp.float32), pad_v(bias5)]))
    aff = jnp.stack(aff_rows)                                # (5, 2, c_max)
    return w_stack, aff, c_max


def _generator_call(x_gnc, w_stack, aff, group_block=None):
    """x_gnc: (G, N, latent_dim) -> (G_pad, n_pad, c_max) padded output."""
    g, n, latent_dim = x_gnc.shape
    c_max = w_stack.shape[-1]
    n_pad = max(_round_up(n, SUBLANE), SUBLANE)

    if group_block is None:
        # Target ~256 stacked matmul rows per grid step: fills the 2x256x256
        # MXU on v6e/v7x; two full passes on v5e's 4x128x128 MXU.
        group_block = max(1, min(g, 256 // n_pad if n_pad <= 256 else 1))
    gb = int(group_block)
    n_steps = -(-g // gb)                                    # cdiv
    g_pad = n_steps * gb

    x_p = jnp.pad(x_gnc.astype(jnp.float32),
                  ((0, g_pad - g), (0, n_pad - n), (0, c_max - latent_dim)))

    kernel = functools.partial(generator_kernel, gb=gb, n_real=n, n_pad=n_pad)

    flops = 2 * g_pad * n_pad * c_max * c_max * 5            # 5 matmuls
    bytes_accessed = 4 * (g_pad * n_pad * c_max * 2          # in + out
                          + 5 * c_max * c_max + 5 * 2 * c_max)
    transcendentals = 4 * g_pad * c_max                      # rsqrt per BN layer

    return pl.pallas_call(
        kernel,
        out_shape=jax.ShapeDtypeStruct((g_pad, n_pad, c_max), jnp.float32),
        grid=(n_steps,),
        in_specs=[
            pl.BlockSpec((gb, n_pad, c_max), lambda i: (i, 0, 0)),  # per-step groups
            pl.BlockSpec((5, c_max, c_max), lambda i: (0, 0, 0)),   # resident weights
            pl.BlockSpec((5, 2, c_max), lambda i: (0, 0, 0)),       # resident affine
        ],
        out_specs=pl.BlockSpec((gb, n_pad, c_max), lambda i: (i, 0, 0)),
        compiler_params=pltpu.CompilerParams(
            dimension_semantics=("parallel",),   # group steps shard across TCs (v7x)
        ),
        cost_estimate=pl.CostEstimate(
            flops=flops, bytes_accessed=bytes_accessed,
            transcendentals=transcendentals),
    )(x_p, w_stack, aff)


@functools.partial(jax.jit, static_argnames=("num_channels",))
def generator_forward_packed(x_nchw, w_stack, aff, *, num_channels):
    """Module-equivalent forward with pre-packed params.

    x: (N, latent_dim, 1, 1) -> (N, num_channels, 1, 1)."""
    n, latent_dim = x_nchw.shape[0], x_nchw.shape[1]
    out = _generator_call(x_nchw.reshape(1, n, latent_dim), w_stack, aff)
    return out[0, :n, :num_channels].reshape(n, num_channels, 1, 1)


@functools.partial(jax.jit, static_argnames=("num_channels", "group_block"))
def generator_forward_grouped(x_g, w_stack, aff, *, num_channels, group_block=None):
    """Throughput path: G independent BN-batches per call, GB per grid step.

    x_g: (G, N, latent_dim, 1, 1) -> (G, N, num_channels, 1, 1)."""
    g, n, latent_dim = x_g.shape[:3]
    out = _generator_call(x_g.reshape(g, n, latent_dim), w_stack, aff, group_block)
    return out[:g, :n, :num_channels].reshape(g, n, num_channels, 1, 1)


def generator_forward(x_nchw, params):
    """Convenience one-shot forward (packs params on every call; prefer
    pack_params + generator_forward_packed in a loop)."""
    n, latent_dim, h, w = x_nchw.shape
    assert h == 1 and w == 1, "Generator expects a 1x1 spatial latent input."
    num_channels = params[-2].shape[1]
    w_stack, aff, _ = pack_params(params, latent_dim)
    return generator_forward_packed(x_nchw, w_stack, aff, num_channels=num_channels)


# ---------------------------------------------------------------------------
# Synthetic parameters + pure-JAX reference
# ---------------------------------------------------------------------------
def init_params(key, latent_dim, base_width, num_channels):
    """Deterministic synthetic parameters matching the PyTorch layer shapes."""
    dims = [
        (latent_dim, base_width * 8),
        (base_width * 8, base_width * 4),
        (base_width * 4, base_width * 2),
        (base_width * 2, base_width * 4),
        (base_width * 4, num_channels),
    ]
    keys = jax.random.split(key, 16)
    params = []
    ki = 0
    for li, (cin, cout) in enumerate(dims):
        w = jax.random.normal(keys[ki], (cin, cout), jnp.float32) * (1.0 / np.sqrt(cin))
        ki += 1
        params.append(w)
        if li < 4:  # BN + ReLU after the first four convs
            gamma = 1.0 + 0.1 * jax.random.normal(keys[ki], (1, cout), jnp.float32)
            ki += 1
            beta = 0.1 * jax.random.normal(keys[ki], (1, cout), jnp.float32)
            ki += 1
            params.extend([gamma, beta])
        else:       # final conv has bias=True
            bias = 0.1 * jax.random.normal(keys[ki], (1, cout), jnp.float32)
            ki += 1
            params.append(bias)
    return tuple(params)


def reference_forward(x_nchw, params):
    """Pure-JAX reference mirroring the PyTorch training-mode forward."""
    n = x_nchw.shape[0]
    h = x_nchw.reshape(n, -1).astype(jnp.float32)
    (w1, g1, b1, w2, g2, b2, w3, g3, b3, w4, g4, b4, w5, bias5) = params
    for w, g, b in ((w1, g1, b1), (w2, g2, b2), (w3, g3, b3), (w4, g4, b4)):
        h = h @ w
        mu = jnp.mean(h, axis=0, keepdims=True)
        var = jnp.mean((h - mu) ** 2, axis=0, keepdims=True)
        h = (h - mu) / jnp.sqrt(var + BN_EPS) * g + b
        h = jnp.maximum(h, 0.0)
    h = h @ w5 + bias5
    return h.reshape(n, -1, 1, 1)


if __name__ == "__main__":
    latent_dim = 32
    base_width = 16
    num_channels = 64

    key = jax.random.PRNGKey(0)
    k_x, k_p, k_g = jax.random.split(key, 3)
    params = init_params(k_p, latent_dim, base_width, num_channels)
    # Pack once, reuse across calls (hoisted out of the hot path).
    w_stack, aff, _ = pack_params(params, latent_dim)

    # 1) Module-equivalent forward; batch=6 (not a multiple of 8) exercises the
    #    row-mask / masked-variance path.
    batch = 6
    x = jax.random.normal(k_x, (batch, latent_dim, 1, 1), jnp.float32)
    out = jax.block_until_ready(
        generator_forward_packed(x, w_stack, aff, num_channels=num_channels))
    ref = reference_forward(x, params)
    np.testing.assert_allclose(np.asarray(out), np.asarray(ref), rtol=1e-4, atol=1e-4)
    assert out.shape == (batch, num_channels, 1, 1)

    # 2) Grouped throughput path: 6 independent BN-batches, blocked 4 per grid
    #    step (multi-step grid + group padding exercised).
    n_groups, batch_g = 6, 8
    x_g = jax.random.normal(k_g, (n_groups, batch_g, latent_dim, 1, 1), jnp.float32)
    out_g = jax.block_until_ready(
        generator_forward_grouped(x_g, w_stack, aff,
                                  num_channels=num_channels, group_block=4))
    for gi in range(n_groups):
        ref_g = reference_forward(x_g[gi], params)
        np.testing.assert_allclose(np.asarray(out_g[gi]), np.asarray(ref_g),
                                   rtol=1e-4, atol=1e-4)
    assert out_g.shape == (n_groups, batch_g, num_channels, 1, 1)

    # 3) Auto group-blocking (all 6 groups stacked into one fat-M grid step).
    out_auto = jax.block_until_ready(
        generator_forward_grouped(x_g, w_stack, aff, num_channels=num_channels))
    np.testing.assert_allclose(np.asarray(out_auto), np.asarray(out_g),
                               rtol=1e-5, atol=1e-5)

    print("KERNEL_OK")
</pallas_src>

<mosaic_0001>
module attributes {stable_mosaic.version = 11 : i64} {
  func.func @generator_kernel(%arg0: i32, %arg1: memref<1x8x128xf32, #tpu.memory_space<vmem>>, %arg2: memref<5x128x128xf32, #tpu.memory_space<vmem>>, %arg3: memref<5x2x128xf32, #tpu.memory_space<vmem>>, %arg4: memref<1x8x128xf32, #tpu.memory_space<vmem>>) attributes {dimension_semantics = [#tpu.dimension_semantics<parallel>], iteration_bounds = array<i64: 1>, scalar_prefetch = 0 : i64, scratch_operands = 0 : i64, tpu.core_type = #tpu.core_type<tc>, window_params = [{transform_indices = @transform_0, window_bounds = array<i64: 1, 8, 128>}, {pipeline_mode = #tpu.pipeline_mode<synchronous>, transform_indices = @transform_1, window_bounds = array<i64: 5, 128, 128>}, {pipeline_mode = #tpu.pipeline_mode<synchronous>, transform_indices = @transform_2, window_bounds = array<i64: 5, 2, 128>}, {transform_indices = @transform_3, window_bounds = array<i64: 1, 8, 128>}]} {
    %0 = tpu.iota {dimensions = array<i32: 1>} : vector<1x8x128xi32>
    %c6_i32 = arith.constant 6 : i32
    %1 = vector.broadcast %c6_i32 : i32 to vector<1x8x128xi32>
    %2 = arith.cmpi slt, %0, %1 : vector<1x8x128xi32>
    %3 = arith.extui %2 : vector<1x8x128xi1> to vector<1x8x128xi32>
    %4 = arith.sitofp %3 : vector<1x8x128xi32> to vector<1x8x128xf32>
    %c0 = arith.constant 0 : index
    %c0_0 = arith.constant 0 : index
    %c0_1 = arith.constant 0 : index
    %5 = vector.load %arg1[%c0, %c0_0, %c0_1] : memref<1x8x128xf32, #tpu.memory_space<vmem>>, vector<1x8x128xf32>
    %6 = vector.shape_cast %5 : vector<1x8x128xf32> to vector<8x128xf32>
    %c0_2 = arith.constant 0 : index
    %c0_3 = arith.constant 0 : index
    %c0_4 = arith.constant 0 : index
    %7 = vector.load %arg2[%c0_2, %c0_3, %c0_4] : memref<5x128x128xf32, #tpu.memory_space<vmem>>, vector<1x128x128xf32>
    %8 = vector.shape_cast %7 : vector<1x128x128xf32> to vector<128x128xf32>
    %cst = arith.constant dense<0.000000e+00> : vector<8x128xf32>
    %9 = tpu.matmul %6, %8, %cst {dimension_numbers = #tpu.dot_dimension_numbers<[1], [0], [0], [1], [0, 0, 1, 1], [], []>} : vector<8x128xf32>, vector<128x128xf32>, vector<8x128xf32> -> vector<8x128xf32>
    %10 = vector.shape_cast %9 : vector<8x128xf32> to vector<1x8x128xf32>
    %cst_5 = arith.constant dense<0.000000e+00> : vector<1x128xf32>
    %11 = vector.multi_reduction <add>, %10, %cst_5 [1] : vector<1x8x128xf32> to vector<1x128xf32>
    %12 = vector.shape_cast %11 : vector<1x128xf32> to vector<1x1x128xf32>
    %cst_6 = arith.constant 0.166666672 : f32
    %13 = vector.broadcast %cst_6 : f32 to vector<1x1x128xf32>
    %14 = arith.mulf %12, %13 : vector<1x1x128xf32>
    %15 = vector.broadcast %14 : vector<1x1x128xf32> to vector<1x8x128xf32>
    %16 = arith.subf %10, %15 : vector<1x8x128xf32>
    %17 = arith.mulf %16, %16 : vector<1x8x128xf32>
    %18 = arith.mulf %17, %4 : vector<1x8x128xf32>
    %cst_7 = arith.constant dense<0.000000e+00> : vector<1x128xf32>
    %19 = vector.multi_reduction <add>, %18, %cst_7 [1] : vector<1x8x128xf32> to vector<1x128xf32>
    %20 = vector.shape_cast %19 : vector<1x128xf32> to vector<1x1x128xf32>
    %cst_8 = arith.constant 0.166666672 : f32
    %21 = vector.broadcast %cst_8 : f32 to vector<1x1x128xf32>
    %22 = arith.mulf %20, %21 : vector<1x1x128xf32>
    %c0_9 = arith.constant 0 : index
    %c0_10 = arith.constant 0 : index
    %c0_11 = arith.constant 0 : index
    %23 = vector.load %arg3[%c0_9, %c0_10, %c0_11] : memref<5x2x128xf32, #tpu.memory_space<vmem>>, vector<1x1x128xf32>
    %24 = vector.shape_cast %23 : vector<1x1x128xf32> to vector<1x128xf32>
    %25 = vector.shape_cast %24 : vector<1x128xf32> to vector<1x1x128xf32>
    %c0_12 = arith.constant 0 : index
    %c1 = arith.constant 1 : index
    %c0_13 = arith.constant 0 : index
    %26 = vector.load %arg3[%c0_12, %c1, %c0_13] : memref<5x2x128xf32, #tpu.memory_space<vmem>>, vector<1x1x128xf32>
    %27 = vector.shape_cast %26 : vector<1x1x128xf32> to vector<1x128xf32>
    %28 = vector.shape_cast %27 : vector<1x128xf32> to vector<1x1x128xf32>
    %cst_14 = arith.constant 9.99999974E-6 : f32
    %29 = vector.broadcast %cst_14 : f32 to vector<1x1x128xf32>
    %30 = arith.addf %22, %29 : vector<1x1x128xf32>
    %31 = math.rsqrt %30 : vector<1x1x128xf32>
    %32 = arith.mulf %25, %31 : vector<1x1x128xf32>
    %33 = vector.broadcast %32 : vector<1x1x128xf32> to vector<1x8x128xf32>
    %34 = arith.mulf %16, %33 : vector<1x8x128xf32>
    %35 = vector.broadcast %28 : vector<1x1x128xf32> to vector<1x8x128xf32>
    %36 = arith.addf %34, %35 : vector<1x8x128xf32>
    %cst_15 = arith.constant 0.000000e+00 : f32
    %37 = vector.broadcast %cst_15 : f32 to vector<1x8x128xf32>
    %38 = arith.maximumf %36, %37 : vector<1x8x128xf32>
    %39 = arith.mulf %38, %4 : vector<1x8x128xf32>
    %40 = vector.shape_cast %39 : vector<1x8x128xf32> to vector<8x128xf32>
    %c1_16 = arith.constant 1 : index
    %c0_17 = arith.constant 0 : index
    %c0_18 = arith.constant 0 : index
    %41 = vector.load %arg2[%c1_16, %c0_17, %c0_18] : memref<5x128x128xf32, #tpu.memory_space<vmem>>, vector<1x128x128xf32>
    %42 = vector.shape_cast %41 : vector<1x128x128xf32> to vector<128x128xf32>
    %cst_19 = arith.constant dense<0.000000e+00> : vector<8x128xf32>
    %43 = tpu.matmul %40, %42, %cst_19 {dimension_numbers = #tpu.dot_dimension_numbers<[1], [0], [0], [1], [0, 0, 1, 1], [], []>} : vector<8x128xf32>, vector<128x128xf32>, vector<8x128xf32> -> vector<8x128xf32>
    %44 = vector.shape_cast %43 : vector<8x128xf32> to vector<1x8x128xf32>
    %cst_20 = arith.constant dense<0.000000e+00> : vector<1x128xf32>
    %45 = vector.multi_reduction <add>, %44, %cst_20 [1] : vector<1x8x128xf32> to vector<1x128xf32>
    %46 = vector.shape_cast %45 : vector<1x128xf32> to vector<1x1x128xf32>
    %cst_21 = arith.constant 0.166666672 : f32
    %47 = vector.broadcast %cst_21 : f32 to vector<1x1x128xf32>
    %48 = arith.mulf %46, %47 : vector<1x1x128xf32>
    %49 = vector.broadcast %48 : vector<1x1x128xf32> to vector<1x8x128xf32>
    %50 = arith.subf %44, %49 : vector<1x8x128xf32>
    %51 = arith.mulf %50, %50 : vector<1x8x128xf32>
    %52 = arith.mulf %51, %4 : vector<1x8x128xf32>
    %cst_22 = arith.constant dense<0.000000e+00> : vector<1x128xf32>
    %53 = vector.multi_reduction <add>, %52, %cst_22 [1] : vector<1x8x128xf32> to vector<1x128xf32>
    %54 = vector.shape_cast %53 : vector<1x128xf32> to vector<1x1x128xf32>
    %cst_23 = arith.constant 0.166666672 : f32
    %55 = vector.broadcast %cst_23 : f32 to vector<1x1x128xf32>
    %56 = arith.mulf %54, %55 : vector<1x1x128xf32>
    %c1_24 = arith.constant 1 : index
    %c0_25 = arith.constant 0 : index
    %c0_26 = arith.constant 0 : index
    %57 = vector.load %arg3[%c1_24, %c0_25, %c0_26] : memref<5x2x128xf32, #tpu.memory_space<vmem>>, vector<1x1x128xf32>
    %58 = vector.shape_cast %57 : vector<1x1x128xf32> to vector<1x128xf32>
    %59 = vector.shape_cast %58 : vector<1x128xf32> to vector<1x1x128xf32>
    %c1_27 = arith.constant 1 : index
    %c1_28 = arith.constant 1 : index
    %c0_29 = arith.constant 0 : index
    %60 = vector.load %arg3[%c1_27, %c1_28, %c0_29] : memref<5x2x128xf32, #tpu.memory_space<vmem>>, vector<1x1x128xf32>
    %61 = vector.shape_cast %60 : vector<1x1x128xf32> to vector<1x128xf32>
    %62 = vector.shape_cast %61 : vector<1x128xf32> to vector<1x1x128xf32>
    %cst_30 = arith.constant 9.99999974E-6 : f32
    %63 = vector.broadcast %cst_30 : f32 to vector<1x1x128xf32>
    %64 = arith.addf %56, %63 : vector<1x1x128xf32>
    %65 = math.rsqrt %64 : vector<1x1x128xf32>
    %66 = arith.mulf %59, %65 : vector<1x1x128xf32>
    %67 = vector.broadcast %66 : vector<1x1x128xf32> to vector<1x8x128xf32>
    %68 = arith.mulf %50, %67 : vector<1x8x128xf32>
    %69 = vector.broadcast %62 : vector<1x1x128xf32> to vector<1x8x128xf32>
    %70 = arith.addf %68, %69 : vector<1x8x128xf32>
    %cst_31 = arith.constant 0.000000e+00 : f32
    %71 = vector.broadcast %cst_31 : f32 to vector<1x8x128xf32>
    %72 = arith.maximumf %70, %71 : vector<1x8x128xf32>
    %73 = arith.mulf %72, %4 : vector<1x8x128xf32>
    %74 = vector.shape_cast %73 : vector<1x8x128xf32> to vector<8x128xf32>
    %c2 = arith.constant 2 : index
    %c0_32 = arith.constant 0 : index
    %c0_33 = arith.constant 0 : index
    %75 = vector.load %arg2[%c2, %c0_32, %c0_33] : memref<5x128x128xf32, #tpu.memory_space<vmem>>, vector<1x128x128xf32>
    %76 = vector.shape_cast %75 : vector<1x128x128xf32> to vector<128x128xf32>
    %cst_34 = arith.constant dense<0.000000e+00> : vector<8x128xf32>
    %77 = tpu.matmul %74, %76, %cst_34 {dimension_numbers = #tpu.dot_dimension_numbers<[1], [0], [0], [1], [0, 0, 1, 1], [], []>} : vector<8x128xf32>, vector<128x128xf32>, vector<8x128xf32> -> vector<8x128xf32>
    %78 = vector.shape_cast %77 : vector<8x128xf32> to vector<1x8x128xf32>
    %cst_35 = arith.constant dense<0.000000e+00> : vector<1x128xf32>
    %79 = vector.multi_reduction <add>, %78, %cst_35 [1] : vector<1x8x128xf32> to vector<1x128xf32>
    %80 = vector.shape_cast %79 : vector<1x128xf32> to vector<1x1x128xf32>
    %cst_36 = arith.constant 0.166666672 : f32
    %81 = vector.broadcast %cst_36 : f32 to vector<1x1x128xf32>
    %82 = arith.mulf %80, %81 : vector<1x1x128xf32>
    %83 = vector.broadcast %82 : vector<1x1x128xf32> to vector<1x8x128xf32>
    %84 = arith.subf %78, %83 : vector<1x8x128xf32>
    %85 = arith.mulf %84, %84 : vector<1x8x128xf32>
    %86 = arith.mulf %85, %4 : vector<1x8x128xf32>
    %cst_37 = arith.constant dense<0.000000e+00> : vector<1x128xf32>
    %87 = vector.multi_reduction <add>, %86, %cst_37 [1] : vector<1x8x128xf32> to vector<1x128xf32>
    %88 = vector.shape_cast %87 : vector<1x128xf32> to vector<1x1x128xf32>
    %cst_38 = arith.constant 0.166666672 : f32
    %89 = vector.broadcast %cst_38 : f32 to vector<1x1x128xf32>
    %90 = arith.mulf %88, %89 : vector<1x1x128xf32>
    %c2_39 = arith.constant 2 : index
    %c0_40 = arith.constant 0 : index
    %c0_41 = arith.constant 0 : index
    %91 = vector.load %arg3[%c2_39, %c0_40, %c0_41] : memref<5x2x128xf32, #tpu.memory_space<vmem>>, vector<1x1x128xf32>
    %92 = vector.shape_cast %91 : vector<1x1x128xf32> to vector<1x128xf32>
    %93 = vector.shape_cast %92 : vector<1x128xf32> to vector<1x1x128xf32>
    %c2_42 = arith.constant 2 : index
    %c1_43 = arith.constant 1 : index
    %c0_44 = arith.constant 0 : index
    %94 = vector.load %arg3[%c2_42, %c1_43, %c0_44] : memref<5x2x128xf32, #tpu.memory_space<vmem>>, vector<1x1x128xf32>
    %95 = vector.shape_cast %94 : vector<1x1x128xf32> to vector<1x128xf32>
    %96 = vector.shape_cast %95 : vector<1x128xf32> to vector<1x1x128xf32>
    %cst_45 = arith.constant 9.99999974E-6 : f32
    %97 = vector.broadcast %cst_45 : f32 to vector<1x1x128xf32>
    %98 = arith.addf %90, %97 : vector<1x1x128xf32>
    %99 = math.rsqrt %98 : vector<1x1x128xf32>
    %100 = arith.mulf %93, %99 : vector<1x1x128xf32>
    %101 = vector.broadcast %100 : vector<1x1x128xf32> to vector<1x8x128xf32>
    %102 = arith.mulf %84, %101 : vector<1x8x128xf32>
    %103 = vector.broadcast %96 : vector<1x1x128xf32> to vector<1x8x128xf32>
    %104 = arith.addf %102, %103 : vector<1x8x128xf32>
    %cst_46 = arith.constant 0.000000e+00 : f32
    %105 = vector.broadcast %cst_46 : f32 to vector<1x8x128xf32>
    %106 = arith.maximumf %104, %105 : vector<1x8x128xf32>
    %107 = arith.mulf %106, %4 : vector<1x8x128xf32>
    %108 = vector.shape_cast %107 : vector<1x8x128xf32> to vector<8x128xf32>
    %c3 = arith.constant 3 : index
    %c0_47 = arith.constant 0 : index
    %c0_48 = arith.constant 0 : index
    %109 = vector.load %arg2[%c3, %c0_47, %c0_48] : memref<5x128x128xf32, #tpu.memory_space<vmem>>, vector<1x128x128xf32>
    %110 = vector.shape_cast %109 : vector<1x128x128xf32> to vector<128x128xf32>
    %cst_49 = arith.constant dense<0.000000e+00> : vector<8x128xf32>
    %111 = tpu.matmul %108, %110, %cst_49 {dimension_numbers = #tpu.dot_dimension_numbers<[1], [0], [0], [1], [0, 0, 1, 1], [], []>} : vector<8x128xf32>, vector<128x128xf32>, vector<8x128xf32> -> vector<8x128xf32>
    %112 = vector.shape_cast %111 : vector<8x128xf32> to vector<1x8x128xf32>
    %cst_50 = arith.constant dense<0.000000e+00> : vector<1x128xf32>
    %113 = vector.multi_reduction <add>, %112, %cst_50 [1] : vector<1x8x128xf32> to vector<1x128xf32>
    %114 = vector.shape_cast %113 : vector<1x128xf32> to vector<1x1x128xf32>
    %cst_51 = arith.constant 0.166666672 : f32
    %115 = vector.broadcast %cst_51 : f32 to vector<1x1x128xf32>
    %116 = arith.mulf %114, %115 : vector<1x1x128xf32>
    %117 = vector.broadcast %116 : vector<1x1x128xf32> to vector<1x8x128xf32>
    %118 = arith.subf %112, %117 : vector<1x8x128xf32>
    %119 = arith.mulf %118, %118 : vector<1x8x128xf32>
    %120 = arith.mulf %119, %4 : vector<1x8x128xf32>
    %cst_52 = arith.constant dense<0.000000e+00> : vector<1x128xf32>
    %121 = vector.multi_reduction <add>, %120, %cst_52 [1] : vector<1x8x128xf32> to vector<1x128xf32>
    %122 = vector.shape_cast %121 : vector<1x128xf32> to vector<1x1x128xf32>
    %cst_53 = arith.constant 0.166666672 : f32
    %123 = vector.broadcast %cst_53 : f32 to vector<1x1x128xf32>
    %124 = arith.mulf %122, %123 : vector<1x1x128xf32>
    %c3_54 = arith.constant 3 : index
    %c0_55 = arith.constant 0 : index
    %c0_56 = arith.constant 0 : index
    %125 = vector.load %arg3[%c3_54, %c0_55, %c0_56] : memref<5x2x128xf32, #tpu.memory_space<vmem>>, vector<1x1x128xf32>
    %126 = vector.shape_cast %125 : vector<1x1x128xf32> to vector<1x128xf32>
    %127 = vector.shape_cast %126 : vector<1x128xf32> to vector<1x1x128xf32>
    %c3_57 = arith.constant 3 : index
    %c1_58 = arith.constant 1 : index
    %c0_59 = arith.constant 0 : index
    %128 = vector.load %arg3[%c3_57, %c1_58, %c0_59] : memref<5x2x128xf32, #tpu.memory_space<vmem>>, vector<1x1x128xf32>
    %129 = vector.shape_cast %128 : vector<1x1x128xf32> to vector<1x128xf32>
    %130 = vector.shape_cast %129 : vector<1x128xf32> to vector<1x1x128xf32>
    %cst_60 = arith.constant 9.99999974E-6 : f32
    %131 = vector.broadcast %cst_60 : f32 to vector<1x1x128xf32>
    %132 = arith.addf %124, %131 : vector<1x1x128xf32>
    %133 = math.rsqrt %132 : vector<1x1x128xf32>
    %134 = arith.mulf %127, %133 : vector<1x1x128xf32>
    %135 = vector.broadcast %134 : vector<1x1x128xf32> to vector<1x8x128xf32>
    %136 = arith.mulf %118, %135 : vector<1x8x128xf32>
    %137 = vector.broadcast %130 : vector<1x1x128xf32> to vector<1x8x128xf32>
    %138 = arith.addf %136, %137 : vector<1x8x128xf32>
    %cst_61 = arith.constant 0.000000e+00 : f32
    %139 = vector.broadcast %cst_61 : f32 to vector<1x8x128xf32>
    %140 = arith.maximumf %138, %139 : vector<1x8x128xf32>
    %141 = arith.mulf %140, %4 : vector<1x8x128xf32>
    %142 = vector.shape_cast %141 : vector<1x8x128xf32> to vector<8x128xf32>
    %c4 = arith.constant 4 : index
    %c0_62 = arith.constant 0 : index
    %c0_63 = arith.constant 0 : index
    %143 = vector.load %arg2[%c4, %c0_62, %c0_63] : memref<5x128x128xf32, #tpu.memory_space<vmem>>, vector<1x128x128xf32>
    %144 = vector.shape_cast %143 : vector<1x128x128xf32> to vector<128x128xf32>
    %cst_64 = arith.constant dense<0.000000e+00> : vector<8x128xf32>
    %145 = tpu.matmul %142, %144, %cst_64 {dimension_numbers = #tpu.dot_dimension_numbers<[1], [0], [0], [1], [0, 0, 1, 1], [], []>} : vector<8x128xf32>, vector<128x128xf32>, vector<8x128xf32> -> vector<8x128xf32>
    %c4_65 = arith.constant 4 : index
    %c1_66 = arith.constant 1 : index
    %c0_67 = arith.constant 0 : index
    %146 = vector.load %arg3[%c4_65, %c1_66, %c0_67] : memref<5x2x128xf32, #tpu.memory_space<vmem>>, vector<1x1x128xf32>
    %147 = vector.shape_cast %146 : vector<1x1x128xf32> to vector<1x128xf32>
    %148 = vector.broadcast %147 : vector<1x128xf32> to vector<8x128xf32>
    %149 = arith.addf %145, %148 : vector<8x128xf32>
    %150 = vector.shape_cast %149 : vector<8x128xf32> to vector<1x8x128xf32>
    %c0_68 = arith.constant 0 : index
    %c0_69 = arith.constant 0 : index
    %c0_70 = arith.constant 0 : index
    %151 = vector.load %arg4[%c0_68, %c0_69, %c0_70] : memref<1x8x128xf32, #tpu.memory_space<vmem>>, vector<1x8x128xf32>
    tpu.vector_store %arg4[%c0_68, %c0_69, %c0_70], %150 {strides = array<i32>} : memref<1x8x128xf32, #tpu.memory_space<vmem>>, vector<1x8x128xf32>,
    return
  }
  func.func @transform_0(%arg0: i32) -> (i32, i32, i32) {
    %c0_i32 = arith.constant 0 : i32
    %c0_i32_0 = arith.constant 0 : i32
    %c0_i32_1 = arith.constant 0 : i32
    return %arg0, %c0_i32, %c0_i32_0 : i32, i32, i32
  }
  func.func @transform_1(%arg0: i32) -> (i32, i32, i32) {
    %c0_i32 = arith.constant 0 : i32
    %c0_i32_0 = arith.constant 0 : i32
    %c0_i32_1 = arith.constant 0 : i32
    %c0_i32_2 = arith.constant 0 : i32
    return %c0_i32, %c0_i32_0, %c0_i32_1 : i32, i32, i32
  }
  func.func @transform_2(%arg0: i32) -> (i32, i32, i32) {
    %c0_i32 = arith.constant 0 : i32
    %c0_i32_0 = arith.constant 0 : i32
    %c0_i32_1 = arith.constant 0 : i32
    %c0_i32_2 = arith.constant 0 : i32
    return %c0_i32, %c0_i32_0, %c0_i32_1 : i32, i32, i32
  }
  func.func @transform_3(%arg0: i32) -> (i32, i32, i32) {
    %c0_i32 = arith.constant 0 : i32
    %c0_i32_0 = arith.constant 0 : i32
    %c0_i32_1 = arith.constant 0 : i32
    return %arg0, %c0_i32, %c0_i32_0 : i32, i32, i32
  }
}

</mosaic_0001>

<bundles_post_ra>
// kernel: generator_forward_packed.1
= control target key start
LH: loop header
LB: loop body
LE: loop exit
PB: predicated region body
PF: predicated region fallthrough
CT: control target
= control target key end

     0   :  { %8 = vsyncpa [#allocation3], 0  ;;  %s1050_s12 = smov [#allocation2]   ;;  %s1188_s0 = inlined_call_operand.vmem [shape: f32[1,8,128], index: 0, kind: input, shape index: {}]   ;;  %s1189_s1 = inlined_call_operand.hbm [shape: f32[5,128,128], index: 1, kind: input, shape index: {}]   ;;  %s1190_s2 = inlined_call_operand.vmem [shape: f32[5,2,128], index: 2, kind: input, shape index: {}]   ;;  %s1191_s3 = inlined_call_operand.vmem [shape: f32[1,8,128], index: 3, kind: output, shape index: {}]  }
   0x1   :  { %s16_s13 = sshll.u32 %s1050_s12, 4  ;;  %s1026_s16 = scalar_lea.hbm %s1189_s1, 10240  ;;  %s17_s13 = int_to_ptr.vmem [resolvable:$true] %s16_s13 }
   0x2   :  { %p1027_p0 = scmp.ne.s32.totalorder %s1189_s1, %s1026_s16  ;;  %p1030_p1 = scmp.lt.u32.totalorder %s1026_s16, %s1189_s1 }
   0x4   :  { %p1032_p2 = pnand %p1030_p1, %p1027_p0 }
   0x6   :  { %1035 = shalt.err (!%p1032_p2)
}
   0x7   :  { %s1036_s21 = scalar_lea.vmem %s17_s13, 10240  ;;  %p1041_p4 = scmp.lt.s32.totalorder %s17_s13, %s17_s13 }
   0x8   :  { %p1037_p3 = scmp.ne.s32.totalorder %s17_s13, %s1036_s21  ;;  %p1042_p5 = scmp.lt.s32.totalorder %s1036_s21, %s1036_s21 }
   0xa   :  { %p1043_p6 = por %p1042_p5, %p1041_p4 }
   0xc   :  { %p1044_p7 = pnand %p1043_p6, %p1037_p3 }
   0xe   :  { %1047 = shalt.err (!%p1044_p7)
}
   0xf   :  { %s1051_s22 = smov 128   ;;  %s1052_s23 = smov 8  }
  0x10   :  { %22 = dma.hbm_to_vmem [thread:$0]  %s1189_s1, 10240, %s17_s13, [#allocation3], %s1051_s22, %s1051_s22, %s1052_s23  }
  0x11   :  { %1048 = dma.done.wait [#allocation3], 10240  }
  0x12   :  { %1049 = vsyncadd [#allocation3], 4294957056  ;;  %v1053_v0 = vmov 0.0|0.0   ;;  %vm1054_vm0 = vmmov 0   ;;  %v1055_v1 = vmov 0.0   ;;  %v34_v2 = vld [vmem:[#allocation2] sm:$0xff]  ;;  %v28_v55 = vlaneseq }
  0x13   :  { %892 = vmatprep.subr.bf16.mxu0 %v1053_v0  ;;  %749 = vmatprep.mubr.msk.f32.mxu0 %vm1054_vm0, %v1055_v1  ;;  %v35_v3 = vld [vmem:[#allocation2 + $0x8] sm:$0xff]  ;;  %v36_v4 = vld [vmem:[#allocation2 + $0x10] sm:$0xff]  ;;  %v37_v6 = vld [vmem:[#allocation2 + $0x18] sm:$0xff] }
  0x14   :  { %916 = vmatprep.subr.bf16.mxu1 %v1053_v0  ;;  %784 = vmatprep.mubr.msk.f32.mxu1 %vm1054_vm0, %v1055_v1  ;;  %v893_v5 = vpack.c.bf16 %v35_v3, %v34_v2  ;;  %v896_v7 = vpack.c.bf16 %v37_v6, %v36_v4  ;;  %v38_v8 = vld [vmem:[#allocation2 + $0x20] sm:$0xff]  ;;  %v39_v9 = vld [vmem:[#allocation2 + $0x28] sm:$0xff]  ;;  %v40_v11 = vld [vmem:[#allocation2 + $0x30] sm:$0xff]  ;;  %v29_v58 = vshrl.u32 %v28_v55, 7 }
  0x15   :  { %v899_v10 = vpack.c.bf16 %v39_v9, %v38_v8  ;;  %v41_v12 = vld [vmem:[#allocation2 + $0x38] sm:$0xff]  ;;  %v42_v14 = vld [vmem:[#allocation2 + $0x40] sm:$0xff]  ;;  %v43_v15 = vld [vmem:[#allocation2 + $0x48] sm:$0xff] }
  0x16   :  { %894 = vmatpush3.bf16.msra.mxu0 %v893_v5  ;;  %v902_v13 = vpack.c.bf16 %v41_v12, %v40_v11  ;;  %v905_v16 = vpack.c.bf16 %v43_v15, %v42_v14  ;;  %v44_v17 = vld [vmem:[#allocation2 + $0x50] sm:$0xff]  ;;  %v45_v18 = vld [vmem:[#allocation2 + $0x58] sm:$0xff]  ;;  %v46_v20 = vld [vmem:[#allocation2 + $0x60] sm:$0xff]  ;;  %vm30_vm1 = vcmp.lt.s32.totalorder %v29_v58, 6 }
  0x17   :  { %895 = vmatprep.subr.bf16.mxu0 %v1053_v0  ;;  %v908_v19 = vpack.c.bf16 %v45_v18, %v44_v17  ;;  %v47_v21 = vld [vmem:[#allocation2 + $0x68] sm:$0xff]  ;;  %v48_v23 = vld [vmem:[#allocation2 + $0x70] sm:$0xff]  ;;  %v49_v24 = vld [vmem:[#allocation2 + $0x78] sm:$0xff]  ;;  %v1116_v63 = vsel %vm30_vm1, 1.0, %v1055_v1 }
  0x18   :  { %v911_v22 = vpack.c.bf16 %v47_v21, %v46_v20  ;;  %v914_v25 = vpack.c.bf16 %v49_v24, %v48_v23  ;;  %v33_v26 = vld [vmem:[%s1188_s0] sm:$0xff]  ;;  %v156_v28 = vld [vmem:[#allocation2 + $0x88] sm:$0xff]  ;;  %v157_v30 = vld [vmem:[#allocation2 + $0x90] sm:$0xff] }
  0x19   :  { %v155_v27 = vld [vmem:[#allocation2 + $0x80] sm:$0xff]  ;;  %v158_v31 = vld [vmem:[#allocation2 + $0x98] sm:$0xff]  ;;  %v160_v34 = vld [vmem:[#allocation2 + $0xa8] sm:$0xff] }
  0x1a   :  { %897 = vmatpush3.bf16.msra.mxu0 %v896_v7  ;;  %v917_v29 = vpack.c.bf16 %v156_v28, %v155_v27  ;;  %v920_v32 = vpack.c.bf16 %v158_v31, %v157_v30  ;;  %v159_v33 = vld [vmem:[#allocation2 + $0xa0] sm:$0xff]  ;;  %v161_v36 = vld [vmem:[#allocation2 + $0xb0] sm:$0xff]  ;;  %v162_v37 = vld [vmem:[#allocation2 + $0xb8] sm:$0xff] }
  0x1b   :  { %898 = vmatprep.subr.bf16.mxu0 %v1053_v0  ;;  %v923_v35 = vpack.c.bf16 %v160_v34, %v159_v33  ;;  %v926_v38 = vpack.c.bf16 %v162_v37, %v161_v36  ;;  %v163_v39 = vld [vmem:[#allocation2 + $0xc0] sm:$0xff]  ;;  %v164_v40 = vld [vmem:[#allocation2 + $0xc8] sm:$0xff]  ;;  %v165_v42 = vld [vmem:[#allocation2 + $0xd0] sm:$0xff] }
  0x1c   :  { %918 = vmatpush3.bf16.msra.mxu1 %v917_v29  ;;  %v929_v41 = vpack.c.bf16 %v164_v40, %v163_v39  ;;  %v166_v43 = vld [vmem:[#allocation2 + $0xd8] sm:$0xff]  ;;  %v167_v45 = vld [vmem:[#allocation2 + $0xe0] sm:$0xff]  ;;  %v168_v46 = vld [vmem:[#allocation2 + $0xe8] sm:$0xff] }
  0x1d   :  { %919 = vmatprep.subr.bf16.mxu1 %v1053_v0  ;;  %v932_v44 = vpack.c.bf16 %v166_v43, %v165_v42  ;;  %v935_v47 = vpack.c.bf16 %v168_v46, %v167_v45  ;;  %v169_v48 = vld [vmem:[#allocation2 + $0xf0] sm:$0xff]  ;;  %v170_v49 = vld [vmem:[#allocation2 + $0xf8] sm:$0xff]  ;;  %v137_v12 = vld [vmem:[%s1190_s2] sm:$0x1] }
  0x1e   :  { %900 = vmatpush3.bf16.msra.mxu0 %v899_v10  ;;  %v938_v50 = vpack.c.bf16 %v170_v49, %v169_v48  ;;  %v620_v17 = vld [vmem:[%s1190_s2 + $0x1] ss:$0 sm:$0xff]  ;;  %v278_v23 = vld [vmem:[#allocation2 + $0x108] sm:$0xff]  ;;  %v283_v31 = vld [vmem:[#allocation2 + $0x130] sm:$0xff] }
  0x1f   :  { %901 = vmatprep.subr.bf16.mxu0 %v1053_v0  ;;  %v281_v28 = vld [vmem:[#allocation2 + $0x120] sm:$0xff]  ;;  %v282_v29 = vld [vmem:[#allocation2 + $0x128] sm:$0xff]  ;;  %v287_v37 = vld [vmem:[#allocation2 + $0x150] sm:$0xff] }
  0x20   :  { %921 = vmatpush3.bf16.msra.mxu1 %v920_v32  ;;  %v947_v30 = vpack.c.bf16 %v282_v29, %v281_v28  ;;  %v284_v32 = vld [vmem:[#allocation2 + $0x138] sm:$0xff]  ;;  %v285_v34 = vld [vmem:[#allocation2 + $0x140] sm:$0xff]  ;;  %v291_v43 = vld [vmem:[#allocation2 + $0x170] sm:$0xff] }
  0x21   :  { %922 = vmatprep.subr.bf16.mxu1 %v1053_v0  ;;  %v950_v33 = vpack.c.bf16 %v284_v32, %v283_v31  ;;  %v289_v40 = vld [vmem:[#allocation2 + $0x160] sm:$0xff]  ;;  %v409_v29 = vld [vmem:[#allocation2 + $0x1d0] sm:$0xff] }
  0x22   :  { %903 = vmatpush3.bf16.msra.mxu0 %v902_v13  ;;  %v1122_v13 = vsub.s32 0, %v29_v58  ;;  %v411_v32 = vld [vmem:[#allocation2 + $0x1e0] sm:$0xff] }
  0x23   :  { %904 = vmatprep.subr.bf16.mxu0 %v1053_v0 }
  0x24   :  { %924 = vmatpush3.bf16.msra.mxu1 %v923_v35  ;;  %v286_v35 = vld [vmem:[#allocation2 + $0x148] sm:$0xff] }
  0x25   :  { %925 = vmatprep.subr.bf16.mxu1 %v1053_v0  ;;  %v953_v36 = vpack.c.bf16 %v286_v35, %v285_v34  ;;  %v413_v35 = vld [vmem:[#allocation2 + $0x1f0] sm:$0xff] }
  0x26   :  { %906 = vmatpush3.bf16.msra.mxu0 %v905_v16 }
  0x27   :  { %907 = vmatprep.subr.bf16.mxu0 %v1053_v0 }
  0x28   :  { %927 = vmatpush3.bf16.msra.mxu1 %v926_v38  ;;  %v288_v38 = vld [vmem:[#allocation2 + $0x158] sm:$0xff] }
  0x29   :  { %928 = vmatprep.subr.bf16.mxu1 %v1053_v0  ;;  %v956_v39 = vpack.c.bf16 %v288_v38, %v287_v37 }
  0x2a   :  { %909 = vmatpush3.bf16.msra.mxu0 %v908_v19 }
  0x2b   :  { %910 = vmatprep.subr.bf16.mxu0 %v1053_v0 }
  0x2c   :  { %930 = vmatpush3.bf16.msra.mxu1 %v929_v41  ;;  %v290_v41 = vld [vmem:[#allocation2 + $0x168] sm:$0xff] }
  0x2d   :  { %931 = vmatprep.subr.bf16.mxu1 %v1053_v0  ;;  %v959_v42 = vpack.c.bf16 %v290_v41, %v289_v40 }
  0x2e   :  { %912 = vmatpush3.bf16.msra.mxu0 %v911_v22  ;;  %v277_v22 = vld [vmem:[#allocation2 + $0x100] sm:$0xff] }
  0x2f   :  { %913 = vmatprep.subr.bf16.mxu0 %v1053_v0  ;;  %v941_v24 = vpack.c.bf16 %v278_v23, %v277_v22  ;;  %v404_v22 = vld [vmem:[#allocation2 + $0x1a8] sm:$0xff] }
  0x30   :  { %933 = vmatpush3.bf16.msra.mxu1 %v932_v44  ;;  %v292_v44 = vld [vmem:[#allocation2 + $0x178] sm:$0xff] }
  0x31   :  { %934 = vmatprep.subr.bf16.mxu1 %v1053_v0  ;;  %v962_v45 = vpack.c.bf16 %v292_v44, %v291_v43 }
  0x32   :  { %915 = vmatpush3.bf16.msra.mxu0 %v914_v25  ;;  %v279_v25 = vld [vmem:[#allocation2 + $0x110] sm:$0xff] }
  0x33   :  { %940 = vmatprep.subr.bf16.mxu0 %v1053_v0 }
  0x34   :  { %936 = vmatpush3.bf16.msra.mxu1 %v935_v47 }
  0x35   :  { %750 = vmatmul.mubr.f32.vlgmr.msra.gmra.mrb[0].mxu0 %v33_v26  ;;  %937 = vmatprep.subr.bf16.mxu1 %v1053_v0  ;;  %v280_v26 = vld [vmem:[#allocation2 + $0x118] sm:$0xff] }
  0x36   :  { %819 = vmatprep.mubr.msk.f32.mxu0 %vm1054_vm0, %v1055_v1  ;;  %942 = vmatpush3.bf16.msra.mxu0 %v941_v24  ;;  %v944_v27 = vpack.c.bf16 %v280_v26, %v279_v25  ;;  %v405_v24 = vld [vmem:[#allocation2 + $0x1b0] sm:$0xff]  ;;  %v407_v26 = vld [vmem:[#allocation2 + $0x1c0] sm:$0xff] }
  0x37   :  { %943 = vmatprep.subr.bf16.mxu0 %v1053_v0 }
  0x38   :  { %939 = vmatpush3.bf16.msra.mxu1 %v938_v50 }
  0x39   :  { %964 = vmatprep.subr.bf16.mxu1 %v1053_v0 }
  0x3a   :  { %945 = vmatpush3.bf16.msra.mxu0 %v944_v27  ;;  %v408_v27 = vld [vmem:[#allocation2 + $0x1c8] sm:$0xff] }
  0x3b   :  { %946 = vmatprep.subr.bf16.mxu0 %v1053_v0  ;;  %v977_v28 = vpack.c.bf16 %v408_v27, %v407_v26  ;;  %v535_v27 = vld [vmem:[#allocation2 + $0x270] sm:$0xff] }
  0x3e   :  { %948 = vmatpush3.bf16.msra.mxu0 %v947_v30  ;;  %v410_v30 = vld [vmem:[#allocation2 + $0x1d8] sm:$0xff] }
  0x3f   :  { %949 = vmatprep.subr.bf16.mxu0 %v1053_v0  ;;  %v980_v31 = vpack.c.bf16 %v410_v30, %v409_v29 }
  0x42   :  { %951 = vmatpush3.bf16.msra.mxu0 %v950_v33  ;;  %v412_v33 = vld [vmem:[#allocation2 + $0x1e8] sm:$0xff] }
  0x43   :  { %952 = vmatprep.subr.bf16.mxu0 %v1053_v0  ;;  %v983_v34 = vpack.c.bf16 %v412_v33, %v411_v32 }
  0x46   :  { %954 = vmatpush3.bf16.msra.mxu0 %v953_v36  ;;  %v414_v36 = vld [vmem:[#allocation2 + $0x1f8] sm:$0xff] }
  0x47   :  { %955 = vmatprep.subr.bf16.mxu0 %v1053_v0  ;;  %v986_v37 = vpack.c.bf16 %v414_v36, %v413_v35 }
  0x4a   :  { %957 = vmatpush3.bf16.msra.mxu0 %v956_v39 }
  0x4b   :  { %958 = vmatprep.subr.bf16.mxu0 %v1053_v0 }
  0x4e   :  { %960 = vmatpush3.bf16.msra.mxu0 %v959_v42 }
  0x4f   :  { %961 = vmatprep.subr.bf16.mxu0 %v1053_v0 }
  0x52   :  { %963 = vmatpush3.bf16.msra.mxu0 %v962_v45 }
  0x53   :  { %988 = vmatprep.subr.bf16.mxu0 %v1053_v0 }
 0x108   :  { %v116_v51 = vpop.f32.mrb[0].mxu0 }
 0x109   :  { %v120_v52 = vrot.slane %v116_v51, 4  ;;  %v751_v53 = vpop.f32.mrb[1].mxu0 }
 0x10b   :  { %v121_v54 = vadd.f32 %v120_v52, %v116_v51 }
 0x10d   :  { %v122_v56 = vrot.slane %v121_v54, 2 }
 0x10f   :  { %v123_v57 = vadd.f32 %v122_v56, %v121_v54 }
 0x111   :  { %v124_v59 = vrot.slane %v123_v57, 1 }
 0x113   :  { %v125_v60 = vadd.f32 %v124_v59, %v123_v57 }
 0x115   :  { %v126_v61 = vmul.f32 0.16666667, %v125_v60 }
 0x117   :  { %v127_v62 = vsub.f32 %v116_v51, %v126_v61 }
 0x119   :  { %v128_v2 = vmul.f32 %v127_v62, %v127_v62 }
 0x11b   :  { %v129_v3 = vmul.f32 %v1116_v63, %v128_v2 }
 0x11d   :  { %v130_v4 = vrot.slane %v129_v3, 4 }
 0x11f   :  { %v131_v5 = vadd.f32 %v130_v4, %v129_v3 }
 0x121   :  { %v132_v6 = vrot.slane %v131_v5, 2 }
 0x123   :  { %v133_v7 = vadd.f32 %v132_v6, %v131_v5  ;;  %v621_v5 = vld [vmem:[%s1190_s2 + $0x2] sm:$0x1] }
 0x125   :  { %v134_v8 = vrot.slane %v133_v7, 1 }
 0x127   :  { %v135_v9 = vadd.f32 %v134_v8, %v133_v7 }
 0x129   :  { %v136_v10 = vmul.f32 0.16666667, %v135_v9  ;;  %v623_v9 = vld [vmem:[%s1190_s2 + $0x3] ss:$0 sm:$0xff] }
 0x12b   :  { %v139_v11 = vadd.f32 1e-05, %v136_v10 }
 0x12d   :  { %1018 = vrsqrt.f32 %v139_v11 }
 0x137   :  { %v1019_v14 = vpop.eup %1018 }
 0x138   :  { %v141_v15 = vmul.f32 %v1019_v14, %v137_v12 }
 0x13a   :  { %v145_v16 = vrot.slane %v141_v15, %v1122_v13  ;;  %v399_v15 = vld [vmem:[#allocation2 + $0x180] sm:$0xff] }
 0x13c   :  { %v146_v18 = vmul.f32 %v145_v16, %v127_v62  ;;  %v400_v16 = vld [vmem:[#allocation2 + $0x188] sm:$0xff] }
 0x13e   :  { %v151_v19 = vadd.f32 %v620_v17, %v146_v18  ;;  %v965_v17 = vpack.c.bf16 %v400_v16, %v399_v15  ;;  %v401_v18 = vld [vmem:[#allocation2 + $0x190] sm:$0xff] }
 0x13f   :  { %v527_v16 = vld [vmem:[#allocation2 + $0x230] sm:$0xff] }
 0x140   :  { %v152_v20 = vmax.f32 %v151_v19, 0.0  ;;  %v402_v19 = vld [vmem:[#allocation2 + $0x198] sm:$0xff] }
 0x142   :  { %v153_v21 = vmul.f32 %v1116_v63, %v152_v20  ;;  %v968_v20 = vpack.c.bf16 %v402_v19, %v401_v18  ;;  %v529_v19 = vld [vmem:[#allocation2 + $0x240] sm:$0xff] }
 0x144   :  { %785 = vmatmul.mubr.f32.vlgmr.msra.gmra.mrb[0].mxu1 %v153_v21  ;;  %v403_v21 = vld [vmem:[#allocation2 + $0x1a0] sm:$0xff] }
 0x145   :  { %854 = vmatprep.mubr.msk.f32.mxu1 %vm1054_vm0, %v1055_v1  ;;  %966 = vmatpush3.bf16.msra.mxu1 %v965_v17  ;;  %v971_v23 = vpack.c.bf16 %v404_v22, %v403_v21  ;;  %v528_v17 = vld [vmem:[#allocation2 + $0x238] sm:$0xff]  ;;  %v531_v22 = vld [vmem:[#allocation2 + $0x250] sm:$0xff] }
 0x146   :  { %967 = vmatprep.subr.bf16.mxu1 %v1053_v0  ;;  %v998_v18 = vpack.c.bf16 %v528_v17, %v527_v16 }
 0x149   :  { %969 = vmatpush3.bf16.msra.mxu1 %v968_v20  ;;  %v530_v20 = vld [vmem:[#allocation2 + $0x248] sm:$0xff] }
 0x14a   :  { %970 = vmatprep.subr.bf16.mxu1 %v1053_v0  ;;  %v1001_v21 = vpack.c.bf16 %v530_v20, %v529_v19 }
 0x14d   :  { %972 = vmatpush3.bf16.msra.mxu1 %v971_v23  ;;  %v532_v23 = vld [vmem:[#allocation2 + $0x258] sm:$0xff] }
 0x14e   :  { %973 = vmatprep.subr.bf16.mxu1 %v1053_v0 }
 0x217   :  { %v237_v46 = vpop.f32.mrb[0].mxu1 }
 0x218   :  { %v241_v47 = vrot.slane %v237_v46, 4  ;;  %v786_v48 = vpop.f32.mrb[1].mxu1 }
 0x21a   :  { %v242_v49 = vadd.f32 %v241_v47, %v237_v46 }
 0x21c   :  { %v243_v50 = vrot.slane %v242_v49, 2 }
 0x21e   :  { %v244_v51 = vadd.f32 %v243_v50, %v242_v49 }
 0x220   :  { %v245_v52 = vrot.slane %v244_v51, 1 }
 0x222   :  { %v246_v53 = vadd.f32 %v245_v52, %v244_v51 }
 0x224   :  { %v247_v54 = vmul.f32 0.16666667, %v246_v53 }
 0x226   :  { %v248_v55 = vsub.f32 %v237_v46, %v247_v54 }
 0x228   :  { %v249_v56 = vmul.f32 %v248_v55, %v248_v55 }
 0x22a   :  { %v250_v57 = vmul.f32 %v1116_v63, %v249_v56 }
 0x22c   :  { %v251_v58 = vrot.slane %v250_v57, 4 }
 0x22e   :  { %v252_v59 = vadd.f32 %v251_v58, %v250_v57  ;;  %v624_v58 = vld [vmem:[%s1190_s2 + $0x4] sm:$0x1] }
 0x230   :  { %v253_v60 = vrot.slane %v252_v59, 2 }
 0x232   :  { %v254_v61 = vadd.f32 %v253_v60, %v252_v59 }
 0x234   :  { %v255_v62 = vrot.slane %v254_v61, 1 }
 0x236   :  { %v256_v2 = vadd.f32 %v255_v62, %v254_v61  ;;  %v626_v62 = vld [vmem:[%s1190_s2 + $0x5] ss:$0 sm:$0xff] }
 0x238   :  { %v257_v3 = vmul.f32 0.16666667, %v256_v2 }
 0x23a   :  { %v261_v4 = vadd.f32 1e-05, %v257_v3 }
 0x23c   :  { %1020 = vrsqrt.f32 %v261_v4 }
 0x246   :  { %v1021_v6 = vpop.eup %1020 }
 0x247   :  { %v263_v7 = vmul.f32 %v1021_v6, %v621_v5  ;;  %v521_v6 = vld [vmem:[#allocation2 + $0x200] sm:$0xff] }
 0x249   :  { %v267_v8 = vrot.slane %v263_v7, %v1122_v13  ;;  %v522_v7 = vld [vmem:[#allocation2 + $0x208] sm:$0xff] }
 0x24b   :  { %v268_v10 = vmul.f32 %v267_v8, %v248_v55  ;;  %v989_v8 = vpack.c.bf16 %v522_v7, %v521_v6 }
 0x24d   :  { %v273_v11 = vadd.f32 %v623_v9, %v268_v10  ;;  %v523_v9 = vld [vmem:[#allocation2 + $0x210] sm:$0xff]  ;;  %v524_v10 = vld [vmem:[#allocation2 + $0x218] sm:$0xff] }
 0x24f   :  { %v274_v12 = vmax.f32 %v273_v11, 0.0  ;;  %v992_v11 = vpack.c.bf16 %v524_v10, %v523_v9 }
 0x251   :  { %v275_v14 = vmul.f32 %v1116_v63, %v274_v12  ;;  %v525_v12 = vld [vmem:[#allocation2 + $0x220] sm:$0xff] }
 0x253   :  { %820 = vmatmul.mubr.f32.vlgmr.msra.gmra.mrb[2].mxu0 %v275_v14  ;;  %v526_v14 = vld [vmem:[#allocation2 + $0x228] sm:$0xff] }
 0x254   :  { %889 = vmatprep.mubr.msk.f32.mxu0 %vm1054_vm0, %v1055_v1  ;;  %v406_v1 = vld [vmem:[#allocation2 + $0x1b8] sm:$0xff]  ;;  %990 = vmatpush3.bf16.msra.mxu0 %v989_v8  ;;  %v995_v15 = vpack.c.bf16 %v526_v14, %v525_v12 }
 0x255   :  { %v974_v25 = vpack.c.bf16 %v406_v1, %v405_v24  ;;  %991 = vmatprep.subr.bf16.mxu0 %v1053_v0  ;;  %v1004_v24 = vpack.c.bf16 %v532_v23, %v531_v22  ;;  %v533_v1 = vld [vmem:[#allocation2 + $0x260] sm:$0xff] }
 0x257   :  { %975 = vmatpush3.bf16.msra.mxu1 %v974_v25  ;;  %v534_v25 = vld [vmem:[#allocation2 + $0x268] sm:$0xff] }
 0x258   :  { %976 = vmatprep.subr.bf16.mxu1 %v1053_v0  ;;  %993 = vmatpush3.bf16.msra.mxu0 %v992_v11  ;;  %v1007_v26 = vpack.c.bf16 %v534_v25, %v533_v1 }
 0x259   :  { %994 = vmatprep.subr.bf16.mxu0 %v1053_v0 }
 0x25b   :  { %978 = vmatpush3.bf16.msra.mxu1 %v977_v28  ;;  %v536_v28 = vld [vmem:[#allocation2 + $0x278] sm:$0xff] }
 0x25c   :  { %979 = vmatprep.subr.bf16.mxu1 %v1053_v0  ;;  %996 = vmatpush3.bf16.msra.mxu0 %v995_v15  ;;  %v1010_v29 = vpack.c.bf16 %v536_v28, %v535_v27 }
 0x25d   :  { %997 = vmatprep.subr.bf16.mxu0 %v1053_v0 }
 0x25f   :  { %981 = vmatpush3.bf16.msra.mxu1 %v980_v31 }
 0x260   :  { %982 = vmatprep.subr.bf16.mxu1 %v1053_v0  ;;  %999 = vmatpush3.bf16.msra.mxu0 %v998_v18 }
 0x261   :  { %1000 = vmatprep.subr.bf16.mxu0 %v1053_v0 }
 0x263   :  { %984 = vmatpush3.bf16.msra.mxu1 %v983_v34 }
 0x264   :  { %985 = vmatprep.subr.bf16.mxu1 %v1053_v0  ;;  %1002 = vmatpush3.bf16.msra.mxu0 %v1001_v21 }
 0x265   :  { %1003 = vmatprep.subr.bf16.mxu0 %v1053_v0 }
 0x267   :  { %987 = vmatpush3.bf16.msra.mxu1 %v986_v37 }
 0x268   :  { %1005 = vmatpush3.bf16.msra.mxu0 %v1004_v24 }
 0x269   :  { %1006 = vmatprep.subr.bf16.mxu0 %v1053_v0 }
 0x26c   :  { %1008 = vmatpush3.bf16.msra.mxu0 %v1007_v26 }
 0x26d   :  { %1009 = vmatprep.subr.bf16.mxu0 %v1053_v0 }
 0x270   :  { %1011 = vmatpush3.bf16.msra.mxu0 %v1010_v29 }
 0x326   :  { %v359_v38 = vpop.f32.mrb[2].mxu0 }
 0x327   :  { %v363_v39 = vrot.slane %v359_v38, 4  ;;  %v821_v40 = vpop.f32.mrb[3].mxu0 }
 0x329   :  { %v364_v41 = vadd.f32 %v363_v39, %v359_v38 }
 0x32b   :  { %v365_v42 = vrot.slane %v364_v41, 2 }
 0x32d   :  { %v366_v43 = vadd.f32 %v365_v42, %v364_v41 }
 0x32f   :  { %v367_v44 = vrot.slane %v366_v43, 1 }
 0x331   :  { %v368_v45 = vadd.f32 %v367_v44, %v366_v43 }
 0x333   :  { %v369_v46 = vmul.f32 0.16666667, %v368_v45 }
 0x335   :  { %v370_v47 = vsub.f32 %v359_v38, %v369_v46 }
 0x337   :  { %v371_v48 = vmul.f32 %v370_v47, %v370_v47 }
 0x339   :  { %v372_v49 = vmul.f32 %v1116_v63, %v371_v48 }
 0x33b   :  { %v373_v50 = vrot.slane %v372_v49, 4 }
 0x33d   :  { %v374_v51 = vadd.f32 %v373_v50, %v372_v49  ;;  %v627_v49 = vld [vmem:[%s1190_s2 + $0x6] sm:$0x1] }
 0x33f   :  { %v375_v52 = vrot.slane %v374_v51, 2 }
 0x341   :  { %v376_v53 = vadd.f32 %v375_v52, %v374_v51 }
 0x343   :  { %v377_v54 = vrot.slane %v376_v53, 1 }
 0x345   :  { %v378_v55 = vadd.f32 %v377_v54, %v376_v53  ;;  %v629_v53 = vld [vmem:[%s1190_s2 + $0x7] ss:$0 sm:$0xff] }
 0x347   :  { %v379_v56 = vmul.f32 0.16666667, %v378_v55 }
 0x349   :  { %v383_v57 = vadd.f32 1e-05, %v379_v56 }
 0x34b   :  { %1022 = vrsqrt.f32 %v383_v57 }
 0x355   :  { %v1023_v59 = vpop.eup %1022 }
 0x356   :  { %v385_v60 = vmul.f32 %v1023_v59, %v624_v58  ;;  %v631_v58 = vld [vmem:[%s1190_s2 + $0x9] ss:$0 sm:$0xff] }
 0x358   :  { %v389_v61 = vrot.slane %v385_v60, %v1122_v13 }
 0x35a   :  { %v390_v2 = vmul.f32 %v389_v61, %v370_v47 }
 0x35c   :  { %v395_v3 = vadd.f32 %v626_v62, %v390_v2 }
 0x35e   :  { %v396_v4 = vmax.f32 %v395_v3, 0.0 }
 0x360   :  { %v397_v5 = vmul.f32 %v1116_v63, %v396_v4 }
 0x362   :  { %855 = vmatmul.mubr.f32.vlgmr.msra.gmra.mrb[2].mxu1 %v397_v5 }
 0x435   :  { %v481_v30 = vpop.f32.mrb[2].mxu1 }
 0x436   :  { %v485_v31 = vrot.slane %v481_v30, 4  ;;  %v856_v32 = vpop.f32.mrb[3].mxu1 }
 0x438   :  { %v486_v33 = vadd.f32 %v485_v31, %v481_v30 }
 0x43a   :  { %v487_v34 = vrot.slane %v486_v33, 2 }
 0x43c   :  { %v488_v35 = vadd.f32 %v487_v34, %v486_v33 }
 0x43e   :  { %v489_v36 = vrot.slane %v488_v35, 1 }
 0x440   :  { %v490_v37 = vadd.f32 %v489_v36, %v488_v35 }
 0x442   :  { %v491_v38 = vmul.f32 0.16666667, %v490_v37 }
 0x444   :  { %v492_v39 = vsub.f32 %v481_v30, %v491_v38 }
 0x446   :  { %v493_v40 = vmul.f32 %v492_v39, %v492_v39 }
 0x448   :  { %v494_v41 = vmul.f32 %v1116_v63, %v493_v40 }
 0x44a   :  { %v495_v42 = vrot.slane %v494_v41, 4 }
 0x44c   :  { %v496_v43 = vadd.f32 %v495_v42, %v494_v41 }
 0x44e   :  { %v497_v0 = vrot.slane %v496_v43, 2 }
 0x450   :  { %v498_v44 = vadd.f32 %v497_v0, %v496_v43 }
 0x452   :  { %v499_v45 = vrot.slane %v498_v44, 1 }
 0x454   :  { %v500_v46 = vadd.f32 %v499_v45, %v498_v44 }
 0x456   :  { %v501_v47 = vmul.f32 0.16666667, %v500_v46 }
 0x458   :  { %v505_v48 = vadd.f32 1e-05, %v501_v47 }
 0x45a   :  { %1024 = vrsqrt.f32 %v505_v48 }
 0x464   :  { %v1025_v50 = vpop.eup %1024 }
 0x465   :  { %v507_v51 = vmul.f32 %v1025_v50, %v627_v49 }
 0x467   :  { %v511_v52 = vrot.slane %v507_v51, %v1122_v13 }
 0x469   :  { %v512_v54 = vmul.f32 %v511_v52, %v492_v39 }
 0x46b   :  { %v517_v55 = vadd.f32 %v629_v53, %v512_v54 }
 0x46d   :  { %v518_v56 = vmax.f32 %v517_v55, 0.0 }
 0x46f   :  { %v519_v57 = vmul.f32 %v1116_v63, %v518_v56 }
 0x471   :  { %890 = vmatmul.mubr.f32.vlgmr.msra.gmra.mrb[4].mxu0 %v519_v57 }
 0x544   :  { %v609_v59 = vpop.f32.mrb[4].mxu0 }
 0x545   :  { %v610_v60 = vadd.f32 %v631_v58, %v609_v59  ;;  %v891_v61 = vpop.f32.mrb[5].mxu0 }
 0x547   :  { %613 = vst [vmem:[%s1191_s3] sm:$0xff] %v610_v60 }
 0x548   :  { %618 = vsyncpa [#allocation3], 1 }

</bundles_post_ra>
